<compile_context>
chip_gen: v7x
topology: tpu7x:2x2x1
jax: 0.10.0
libtpu: 0.0.40
codegen_flags: <defaults>
</compile_context>

<pallas_src>
import functools

import jax
import jax.numpy as jnp
from jax.experimental import pallas as pl
from jax.experimental.pallas import tpu as pltpu


LN_EPS = 1e-5  # PyTorch nn.LayerNorm default


def _patch_merge_kernel(x_ref, wa_ref, wb_ref, bias_ref, o_ref, *, flatten):
    """Fused 2x2 merge + LayerNorm(4C) + Linear(4C -> out) for one row block.

    x_ref:    (tr, 2, wh, 2C)  tr image row-pairs, channels last.
              x_ref[:, 0] = even image rows -> [x0 | x2] halves of each patch
              x_ref[:, 1] = odd  image rows -> [x1 | x3] halves
    wa_ref:   (2C, out_pad) bf16   weight rows for [x0 | x2] (gamma folded in)
    wb_ref:   (2C, out_pad) bf16   weight rows for [x1 | x3] (gamma folded in)
    bias_ref: (1, out_pad)  f32    beta @ W (LayerNorm bias pushed through Linear)
    o_ref:    (tr*wh, out_pad) if flatten else (tr, wh, out_pad)

    NOTE: when the grid has a partial tail block, out-of-bounds rows contain
    garbage that flows through rsqrt (possibly inf/nan) before the masked
    writeback discards them.  This is benign on TPU — do not "fix" it.
    """
    # Load the two halves directly (no full-tile load followed by slicing).
    ev = x_ref[:, 0].astype(jnp.float32)        # (tr, wh, 2C)  [x0 | x2]
    od = x_ref[:, 1].astype(jnp.float32)        # (tr, wh, 2C)  [x1 | x3]

    inv_4c = 1.0 / (2 * ev.shape[-1])
    # Single-pass LayerNorm statistics over the full 4C feature (split halves).
    mean = (jnp.sum(ev, -1, keepdims=True)
            + jnp.sum(od, -1, keepdims=True)) * inv_4c
    ex2 = (jnp.sum(ev * ev, -1, keepdims=True)
           + jnp.sum(od * od, -1, keepdims=True)) * inv_4c
    var = jnp.maximum(ex2 - mean * mean, 0.0)   # E[x^2] - mean^2, clamped
    inv = jax.lax.rsqrt(var + LN_EPS)

    ne = (ev - mean) * inv                      # f32 (tr, wh, 2C)
    no = (od - mean) * inv

    if flatten:
        # wh % 8 == 0: flattening the f32 (8,128)-tiled value is a free view;
        # cast to bf16 AFTER the reshape so no packed-sublane relayout occurs.
        tr, wh, c2 = ne.shape
        ne2 = ne.reshape(tr * wh, c2).astype(jnp.bfloat16)
        no2 = no.reshape(tr * wh, c2).astype(jnp.bfloat16)
        acc = jnp.dot(ne2, wa_ref[...], preferred_element_type=jnp.float32)
        acc = acc + jnp.dot(no2, wb_ref[...], preferred_element_type=jnp.float32)
        o_ref[...] = (acc + bias_ref[...]).astype(o_ref.dtype)
    else:
        # wh not sublane-aligned: keep 3-D operands (no VMEM relayout copy) and
        # contract the last dim; the output block is (tr, wh, out_pad).
        dn = (((2,), (0,)), ((), ()))
        acc = jax.lax.dot_general(ne.astype(jnp.bfloat16), wa_ref[...], dn,
                                  preferred_element_type=jnp.float32)
        acc = acc + jax.lax.dot_general(no.astype(jnp.bfloat16), wb_ref[...], dn,
                                        preferred_element_type=jnp.float32)
        o_ref[...] = (acc + bias_ref[...]).astype(o_ref.dtype)


@functools.partial(jax.jit, static_argnames=("input_resolution", "block_rows"))
def patch_merging(x, gamma, beta, w_reduction, *, input_resolution,
                  block_rows=1024):
    """Forward pass of PatchMerging.

    x:            (B, H*W, C)   activations (bf16 recommended; dtype preserved)
    gamma, beta:  (4*C,)        LayerNorm params
    w_reduction:  (out, 4*C)    Linear weight, PyTorch (out_features, in_features)
    returns:      (B, H/2 * W/2, out) in x.dtype
    """
    h, w = input_resolution
    b, l, c = x.shape
    assert l == h * w and h % 2 == 0 and w % 2 == 0

    wh = w // 2
    r = b * (h // 2)               # number of image row-pairs
    n_rows = r * wh                # number of merged patches
    c2 = 2 * c
    out_ch = w_reduction.shape[0]
    out_pad = ((out_ch + 127) // 128) * 128   # lane-dense output stores
    out_dtype = x.dtype

    # Copy-free reshape: (B, H*W, C) -> (R, 2, W/2, 2C)
    #   x4[rp, p, j, :] = concat(x[b, 2i+p, 2j, :], x[b, 2i+p, 2j+1, :])
    x4 = x.reshape(r, 2, wh, c2)

    # Fold the LayerNorm affine into the reduction weight (tiny, one-time) and
    # permute its rows so the [x0|x2] / [x1|x3] halves match PyTorch's
    # [x0, x1, x2, x3] channel order; push beta through the Linear as a bias.
    wt = gamma.astype(jnp.float32)[:, None] * w_reduction.astype(jnp.float32).T
    bias = (beta.astype(jnp.float32)
            @ w_reduction.astype(jnp.float32).T).reshape(1, out_ch)
    wa = jnp.concatenate([wt[0:c], wt[2 * c:3 * c]], axis=0)
    wb = jnp.concatenate([wt[c:2 * c], wt[3 * c:4 * c]], axis=0)
    if out_pad != out_ch:
        pad = out_pad - out_ch
        wa = jnp.pad(wa, ((0, 0), (0, pad)))
        wb = jnp.pad(wb, ((0, 0), (0, pad)))
        bias = jnp.pad(bias, ((0, 0), (0, pad)))
    wa = wa.astype(jnp.bfloat16)
    wb = wb.astype(jnp.bfloat16)

    # --- row-pair tile (tr) selection --------------------------------------
    x_item = jnp.dtype(x.dtype).itemsize
    o_item = jnp.dtype(out_dtype).itemsize
    vmem_budget = 32 * 1024 * 1024                  # conservative: fits v7x 64 MiB/TC
    per_rp = (2 * (2 * wh * c2 * x_item)            # double-buffered input tile
              + 2 * (wh * out_pad * o_item)         # double-buffered output tile
              + 3 * (2 * wh * c2 * 4)               # f32 LN temporaries (both halves)
              + (wh * out_pad * 4))                 # f32 matmul accumulator
    fixed = 2 * (2 * c2 * out_pad * 2 + out_pad * 4) + (1 << 20)  # weights + slack
    tr_vmem = max(1, (vmem_budget - fixed) // per_rp)
    tr_target = max(1, block_rows // wh)            # ~block_rows merged rows / step
    tr_two = -(-r // 2)                             # keep grid >= 2 (v7x: 2 TCs)
    tr = max(1, min(tr_target, tr_vmem, tr_two, r))
    grid = pl.cdiv(r, tr)                           # tail block handled by masking
    vmem_limit = int(max(16 * 1024 * 1024, fixed + tr * per_rp))

    flatten = (wh % 8 == 0)
    kernel = functools.partial(_patch_merge_kernel, flatten=flatten)

    if flatten:
        out_shape = jax.ShapeDtypeStruct((n_rows, out_pad), out_dtype)
        out_spec = pl.BlockSpec((tr * wh, out_pad), lambda i: (i, 0))
    else:
        out_shape = jax.ShapeDtypeStruct((r, wh, out_pad), out_dtype)
        out_spec = pl.BlockSpec((tr, wh, out_pad), lambda i: (i, 0, 0))

    # NOTE: wa/wb/bias have constant index maps; Pallas keeps them resident.
    # (Single-buffering them via pipeline_mode would shave a little more VMEM
    # on v7x but is left at the default for portability.)
    out = pl.pallas_call(
        kernel,
        out_shape=out_shape,
        grid_spec=pltpu.PrefetchScalarGridSpec(
            num_scalar_prefetch=0,
            grid=(grid,),
            in_specs=[
                pl.BlockSpec((tr, 2, wh, c2), lambda i: (i, 0, 0, 0)),
                pl.BlockSpec((c2, out_pad), lambda i: (0, 0)),
                pl.BlockSpec((c2, out_pad), lambda i: (0, 0)),
                pl.BlockSpec((1, out_pad), lambda i: (0, 0)),
            ],
            out_specs=out_spec,
        ),
        compiler_params=pltpu.CompilerParams(
            dimension_semantics=("parallel",),
            vmem_limit_bytes=vmem_limit,
        ),
    )(x4, wa, wb, bias)

    out = out.reshape(n_rows, out_pad)
    if out_pad != out_ch:
        out = out[:, :out_ch]
    return out.reshape(b, (h // 2) * (w // 2), out_ch)


def _reference(x, gamma, beta, w_reduction, input_resolution):
    """Pure-JAX f32 reference matching the PyTorch forward exactly."""
    h, w = input_resolution
    b, _, c = x.shape
    xg = x.reshape(b, h, w, c)
    x0 = xg[:, 0::2, 0::2, :]
    x1 = xg[:, 1::2, 0::2, :]
    x2 = xg[:, 0::2, 1::2, :]
    x3 = xg[:, 1::2, 1::2, :]
    xm = jnp.concatenate([x0, x1, x2, x3], axis=-1).reshape(b, -1, 4 * c)
    mean = jnp.mean(xm, axis=-1, keepdims=True)
    var = jnp.mean((xm - mean) ** 2, axis=-1, keepdims=True)
    xn = (xm - mean) / jnp.sqrt(var + LN_EPS) * gamma + beta
    return xn @ w_reduction.T


if __name__ == "__main__":
    # Small shapes consistent with the module:
    #   input_resolution = (16, 16), dim (C) = 32, out_channels = 2*C = 64
    B, H, W, C = 2, 16, 16, 32
    OUT = 2 * C

    key = jax.random.PRNGKey(0)
    kx, kw = jax.random.split(key)
    x_f32 = jax.random.normal(kx, (B, H * W, C), dtype=jnp.float32)
    x = x_f32.astype(jnp.bfloat16)          # bf16 activation I/O (mem-bound kernel)

    # Deterministic parameter init (synthetic; mirrors the module's shapes).
    gamma = jnp.ones((4 * C,), dtype=jnp.float32)            # LayerNorm weight = 1
    beta = jnp.zeros((4 * C,), dtype=jnp.float32)            # LayerNorm bias   = 0
    w_reduction = 0.02 * jax.random.normal(kw, (OUT, 4 * C), dtype=jnp.float32)

    out = patch_merging(x, gamma, beta, w_reduction, input_resolution=(H, W))
    out = jax.block_until_ready(out)

    # Reference uses the same bf16-quantized input, computed in f32.
    ref = _reference(x.astype(jnp.float32), gamma, beta, w_reduction, (H, W))
    assert out.shape == (B, (H // 2) * (W // 2), OUT), out.shape
    assert out.dtype == x.dtype, out.dtype
    max_err = float(jnp.max(jnp.abs(out.astype(jnp.float32) - ref)))
    # bf16 activations / weights / output with f32 accumulation -> relaxed tol.
    assert max_err < 3e-2, f"max abs error {max_err}"
    print("KERNEL_OK")
</pallas_src>

<mosaic_0001>
module attributes {stable_mosaic.version = 11 : i64} {
  func.func @_patch_merge_kernel(%arg0: i32, %arg1: memref<8x2x8x64xbf16, #tpu.memory_space<vmem>>, %arg2: memref<64x128xbf16, #tpu.memory_space<vmem>>, %arg3: memref<64x128xbf16, #tpu.memory_space<vmem>>, %arg4: memref<1x128xf32, #tpu.memory_space<vmem>>, %arg5: memref<64x128xbf16, #tpu.memory_space<vmem>>) attributes {dimension_semantics = [#tpu.dimension_semantics<parallel>], iteration_bounds = array<i64: 2>, scalar_prefetch = 0 : i64, scratch_operands = 0 : i64, tpu.core_type = #tpu.core_type<tc>, window_params = [{transform_indices = @transform_0, window_bounds = array<i64: 8, 2, 8, 64>}, {pipeline_mode = #tpu.pipeline_mode<synchronous>, transform_indices = @transform_1, window_bounds = array<i64: 64, 128>}, {pipeline_mode = #tpu.pipeline_mode<synchronous>, transform_indices = @transform_2, window_bounds = array<i64: 64, 128>}, {pipeline_mode = #tpu.pipeline_mode<synchronous>, transform_indices = @transform_3, window_bounds = array<i64: 1, 128>}, {transform_indices = @transform_4, window_bounds = array<i64: 64, 128>}]} {
    %c0 = arith.constant 0 : index
    %c0_0 = arith.constant 0 : index
    %c0_1 = arith.constant 0 : index
    %c0_2 = arith.constant 0 : index
    %0 = vector.load %arg1[%c0, %c0_0, %c0_1, %c0_2] : memref<8x2x8x64xbf16, #tpu.memory_space<vmem>>, vector<8x1x8x64xbf16>
    %1 = vector.shape_cast %0 : vector<8x1x8x64xbf16> to vector<8x8x64xbf16>
    %2 = arith.extf %1 : vector<8x8x64xbf16> to vector<8x8x64xf32>
    %c0_3 = arith.constant 0 : index
    %c1 = arith.constant 1 : index
    %c0_4 = arith.constant 0 : index
    %c0_5 = arith.constant 0 : index
    %3 = vector.load %arg1[%c0_3, %c1, %c0_4, %c0_5] : memref<8x2x8x64xbf16, #tpu.memory_space<vmem>>, vector<8x1x8x64xbf16>
    %4 = vector.shape_cast %3 : vector<8x1x8x64xbf16> to vector<8x8x64xbf16>
    %5 = arith.extf %4 : vector<8x8x64xbf16> to vector<8x8x64xf32>
    %cst = arith.constant dense<0.000000e+00> : vector<8x8xf32>
    %6 = vector.multi_reduction <add>, %2, %cst [2] : vector<8x8x64xf32> to vector<8x8xf32>
    %7 = vector.shape_cast %6 : vector<8x8xf32> to vector<8x8x1xf32>
    %cst_6 = arith.constant dense<0.000000e+00> : vector<8x8xf32>
    %8 = vector.multi_reduction <add>, %5, %cst_6 [2] : vector<8x8x64xf32> to vector<8x8xf32>
    %9 = vector.shape_cast %8 : vector<8x8xf32> to vector<8x8x1xf32>
    %10 = arith.addf %7, %9 : vector<8x8x1xf32>
    %cst_7 = arith.constant 7.812500e-03 : f32
    %11 = vector.broadcast %cst_7 : f32 to vector<8x8x1xf32>
    %12 = arith.mulf %10, %11 : vector<8x8x1xf32>
    %13 = arith.mulf %2, %2 : vector<8x8x64xf32>
    %cst_8 = arith.constant dense<0.000000e+00> : vector<8x8xf32>
    %14 = vector.multi_reduction <add>, %13, %cst_8 [2] : vector<8x8x64xf32> to vector<8x8xf32>
    %15 = vector.shape_cast %14 : vector<8x8xf32> to vector<8x8x1xf32>
    %16 = arith.mulf %5, %5 : vector<8x8x64xf32>
    %cst_9 = arith.constant dense<0.000000e+00> : vector<8x8xf32>
    %17 = vector.multi_reduction <add>, %16, %cst_9 [2] : vector<8x8x64xf32> to vector<8x8xf32>
    %18 = vector.shape_cast %17 : vector<8x8xf32> to vector<8x8x1xf32>
    %19 = arith.addf %15, %18 : vector<8x8x1xf32>
    %cst_10 = arith.constant 7.812500e-03 : f32
    %20 = vector.broadcast %cst_10 : f32 to vector<8x8x1xf32>
    %21 = arith.mulf %19, %20 : vector<8x8x1xf32>
    %22 = arith.mulf %12, %12 : vector<8x8x1xf32>
    %23 = arith.subf %21, %22 : vector<8x8x1xf32>
    %cst_11 = arith.constant 0.000000e+00 : f32
    %24 = vector.broadcast %cst_11 : f32 to vector<8x8x1xf32>
    %25 = arith.maximumf %23, %24 : vector<8x8x1xf32>
    %cst_12 = arith.constant 9.99999974E-6 : f32
    %26 = vector.broadcast %cst_12 : f32 to vector<8x8x1xf32>
    %27 = arith.addf %25, %26 : vector<8x8x1xf32>
    %28 = math.rsqrt %27 : vector<8x8x1xf32>
    %29 = vector.broadcast %12 : vector<8x8x1xf32> to vector<8x8x64xf32>
    %30 = arith.subf %2, %29 : vector<8x8x64xf32>
    %31 = vector.broadcast %28 : vector<8x8x1xf32> to vector<8x8x64xf32>
    %32 = arith.mulf %30, %31 : vector<8x8x64xf32>
    %33 = vector.broadcast %12 : vector<8x8x1xf32> to vector<8x8x64xf32>
    %34 = arith.subf %5, %33 : vector<8x8x64xf32>
    %35 = vector.broadcast %28 : vector<8x8x1xf32> to vector<8x8x64xf32>
    %36 = arith.mulf %34, %35 : vector<8x8x64xf32>
    %37 = vector.shape_cast %32 : vector<8x8x64xf32> to vector<64x64xf32>
    %38 = arith.truncf %37 : vector<64x64xf32> to vector<64x64xbf16>
    %39 = vector.shape_cast %36 : vector<8x8x64xf32> to vector<64x64xf32>
    %40 = arith.truncf %39 : vector<64x64xf32> to vector<64x64xbf16>
    %c0_13 = arith.constant 0 : index
    %c0_14 = arith.constant 0 : index
    %41 = vector.load %arg2[%c0_13, %c0_14] : memref<64x128xbf16, #tpu.memory_space<vmem>>, vector<64x128xbf16>
    %cst_15 = arith.constant dense<0.000000e+00> : vector<64x128xf32>
    %42 = tpu.matmul %38, %41, %cst_15 {dimension_numbers = #tpu.dot_dimension_numbers<[1], [0], [0], [1], [0, 0, 1, 1], [], []>} : vector<64x64xbf16>, vector<64x128xbf16>, vector<64x128xf32> -> vector<64x128xf32>
    %c0_16 = arith.constant 0 : index
    %c0_17 = arith.constant 0 : index
    %43 = vector.load %arg3[%c0_16, %c0_17] : memref<64x128xbf16, #tpu.memory_space<vmem>>, vector<64x128xbf16>
    %cst_18 = arith.constant dense<0.000000e+00> : vector<64x128xf32>
    %44 = tpu.matmul %40, %43, %cst_18 {dimension_numbers = #tpu.dot_dimension_numbers<[1], [0], [0], [1], [0, 0, 1, 1], [], []>} : vector<64x64xbf16>, vector<64x128xbf16>, vector<64x128xf32> -> vector<64x128xf32>
    %45 = arith.addf %42, %44 : vector<64x128xf32>
    %c0_19 = arith.constant 0 : index
    %c0_20 = arith.constant 0 : index
    %46 = vector.load %arg4[%c0_19, %c0_20] : memref<1x128xf32, #tpu.memory_space<vmem>>, vector<1x128xf32>
    %47 = vector.broadcast %46 : vector<1x128xf32> to vector<64x128xf32>
    %48 = arith.addf %45, %47 : vector<64x128xf32>
    %49 = arith.truncf %48 : vector<64x128xf32> to vector<64x128xbf16>
    %c0_21 = arith.constant 0 : index
    %c0_22 = arith.constant 0 : index
    %50 = vector.load %arg5[%c0_21, %c0_22] : memref<64x128xbf16, #tpu.memory_space<vmem>>, vector<64x128xbf16>
    tpu.vector_store %arg5[%c0_21, %c0_22], %49 {strides = array<i32>} : memref<64x128xbf16, #tpu.memory_space<vmem>>, vector<64x128xbf16>,
    return
  }
  func.func @transform_0(%arg0: i32) -> (i32, i32, i32, i32) {
    %c0_i32 = arith.constant 0 : i32
    %c0_i32_0 = arith.constant 0 : i32
    %c0_i32_1 = arith.constant 0 : i32
    %c0_i32_2 = arith.constant 0 : i32
    return %arg0, %c0_i32, %c0_i32_0, %c0_i32_1 : i32, i32, i32, i32
  }
  func.func @transform_1(%arg0: i32) -> (i32, i32) {
    %c0_i32 = arith.constant 0 : i32
    %c0_i32_0 = arith.constant 0 : i32
    %c0_i32_1 = arith.constant 0 : i32
    return %c0_i32, %c0_i32_0 : i32, i32
  }
  func.func @transform_2(%arg0: i32) -> (i32, i32) {
    %c0_i32 = arith.constant 0 : i32
    %c0_i32_0 = arith.constant 0 : i32
    %c0_i32_1 = arith.constant 0 : i32
    return %c0_i32, %c0_i32_0 : i32, i32
  }
  func.func @transform_3(%arg0: i32) -> (i32, i32) {
    %c0_i32 = arith.constant 0 : i32
    %c0_i32_0 = arith.constant 0 : i32
    %c0_i32_1 = arith.constant 0 : i32
    return %c0_i32, %c0_i32_0 : i32, i32
  }
  func.func @transform_4(%arg0: i32) -> (i32, i32) {
    %c0_i32 = arith.constant 0 : i32
    %c0_i32_0 = arith.constant 0 : i32
    return %arg0, %c0_i32 : i32, i32
  }
}

</mosaic_0001>

<bundles_post_ra>
// kernel: patch_merging.1
= control target key start
LH: loop header
LB: loop body
LE: loop exit
PB: predicated region body
PF: predicated region fallthrough
CT: control target
= control target key end

     0   :  { %9 = vsyncpa [#allocation3], 0  ;;  %s1381_s0 = inlined_call_operand.vmem [shape: bf16[16,2,8,64], index: 0, kind: input, shape index: {}]   ;;  %s1382_s1 = inlined_call_operand.vmem [shape: bf16[64,128], index: 1, kind: input, shape index: {}]   ;;  %s1383_s2 = inlined_call_operand.vmem [shape: bf16[64,128], index: 2, kind: input, shape index: {}]   ;;  %s1384_s3 = inlined_call_operand.vmem [shape: f32[1,128], index: 3, kind: input, shape index: {}]   ;;  %s1385_s4 = inlined_call_operand.hbm [shape: bf16[128,128], index: 4, kind: output, shape index: {}]  }
   0x1   :  { %11 = vsyncpa [#allocation3 + $0x1], 0  ;;  %s1102_s15 = smov 0   ;;  %s1104_s16 = smov 0  }
   0x2   :  { %s1106_s17 = smov 0   ;;  %s1108_s18 = smov 0  }
   0x3 LB: > { %s1123_s19 = sadd.s32 4294967295, %s1072_s18   ;;  %s810_s20 = sadd.s32 4294967294, %s1072_s18   ;;  %s1072_s18 = sphi %s1108_s18, %s1391_s18   ;;  %s1068_s17 = sphi %s1106_s17, %s1390_s17   ;;  %s1064_s16 = sphi %s1104_s16, %s1389_s16   ;;  %s1060_s15 = sphi %s1102_s15, %s1388_s15  }
   0x4   : > { %s1127_s21 = sadd.s32 1, %s1072_s18   ;;  %s113_s22 = sadd.s32 1, %s1068_s17 }
   0x5   : > { %s110_s23 = ssub.s32 %s1072_s18, %s1127_s21  ;;  %p123_p0 = scmp.ne.s32.totalorder %s1068_s17, %s1064_s16 }
   0x6   : > { %p111_p1 = scmp.eq.s32.totalorder %s110_s23, 0  ;;  %p124_p2 = scmp.eq.s32.totalorder %s1123_s19, 1 }
   0x7   : > { %p129_p3 = scmp.ne.s32.totalorder %s1064_s16, %s1060_s15  ;;  %p130_p4 = scmp.eq.s32.totalorder %s810_s20, 1 }
   0x8   : > { %s1138_s24 = scalar_select %p111_p1, %s1068_s17, %s113_s22  }
   0x9   : > { %p1140_p5 = por %p124_p2, %p123_p0  ;;  %p1144_p6 = por %p130_p4, %p129_p3 }
   0xa   : > { %p813_p7 = scmp.ge.s32.totalorder %s1072_s18, 1  ;;  %p167_p8 = scmp.lt.s32.totalorder %s1072_s18, 3 }
   0xc   : > { %p168_p9 = pnand %p813_p7, %p167_p8 }
   0xd   : > { %s815_s27 = sshll.u32 (!%p168_p9), %s1123_s19, 3  ;;  %vm236_vm0 = vcmask (!%p168_p9), 523264   ;;  %s865_s11 = sshll.u32 (!%p168_p9), %s1123_s19, 9 }
   0xe   : > { %171 = sbr.rel (%p168_p9) target bundleno = 492 (0x1ec), region = 36  ;;  %p195_p10 = scmp.lt.s32.totalorder (!%p168_p9), %s815_s27, 15 }
   0xf   : > { %s1336_s14 = scalar_lea.hbm (!%p168_p9), %s1385_s4, %s865_s11  ;;  %s1074_s22 = smov (!%p168_p9), [#allocation2]  }
  0x10   : > { %s1014_s23 = sshll.u32 (!%p168_p9), %s1074_s22, 4  ;;  %s1015_s23 = int_to_ptr.vmem [resolvable:$false] %s1014_s23 }
  0x15   : > { %s1393_s27 = smov (!%p195_p10, %s815_s27), 15 }
  0x16   : > { %s856_s28 = sshll.u32 %s1393_s27, 3  ;;  %s1016_s27 = scalar_lea.vmem %s1015_s23, 1024 }
  0x17   : > { %s1154_s5 = scalar_lea.vmem %s1381_s0, %s856_s28 }
  0x18   : > { %v818_v0 = vld [vmem:[%s1154_s5 + $0x4] sm:$0xff]   ;;  %v203_v1 = vld [vmem:[%s1154_s5] ss:$20 sps:$4 sm:$0xff]   ;;  %v819_v2 = vld [vmem:[%s1154_s5 + $0xc] sm:$0xff]  }
  0x19   : > { %v1159_v3 = vunpack.c.l.bf16 %v818_v0  ;;  %v1161_v4 = vunpack.c.l.bf16 %v203_v1  ;;  %v1163_v5 = vunpack.c.l.bf16 %v819_v2  ;;  %v1165_v6 = vunpack.c.h.bf16 %v818_v0  ;;  %v206_v7 = vld [vmem:[%s1154_s5 + $0x18] sm:$0xff]   ;;  %v208_v34 = vld [vmem:[%s1154_s5 + $0x28] sm:$0xff]   ;;  %v207_v35 = vld [vmem:[%s1154_s5 + $0x20] sm:$0xff]  }
  0x1a   : > { %v1176_v12 = vunpack.c.l.bf16 %v206_v7  ;;  %v1178_v13 = vunpack.c.h.bf16 %v819_v2  ;;  %v1184_v16 = vunpack.c.h.bf16 %v206_v7  ;;  %v1186_v17 = vunpack.c.h.bf16 %v203_v1  ;;  %v210_v44 = vld [vmem:[%s1154_s5 + $0x38] sm:$0xff]   ;;  %v209_v45 = vld [vmem:[%s1154_s5 + $0x30] sm:$0xff]   ;;  %v986_v2 = vld [vmem:[%s1383_s2] sm:$0xff]   ;;  %s191_s5 = sand.u32 1, %s1064_s16  }
  0x1b   : > { %v261_v8 = vsel %vm236_vm0, %v1159_v3, 0.0  ;;  %v237_v9 = vsel %vm236_vm0, %v1161_v4, 0.0  ;;  %v264_v10 = vsel %vm236_vm0, %v1163_v5, 0.0  ;;  %v240_v11 = vsel %vm236_vm0, %v1165_v6, 0.0  ;;  %v987_v7 = vld [vmem:[%s1382_s1] sm:$0xff]   ;;  %905 = vmatprep.subr.bf16.mxu1 %v986_v2  ;;  %s814_s8 = sshll.u32 %s191_s5, 5 }
  0x1c   : > { %262 = vadd.xlane.f32.xlu1 %v261_v8  ;;  %238 = vadd.xlane.f32.xlu0 %v237_v9  ;;  %v246_v14 = vsel %vm236_vm0, %v1176_v12, 0.0  ;;  %v243_v15 = vsel %vm236_vm0, %v1178_v13, 0.0  ;;  %v270_v18 = vsel %vm236_vm0, %v1184_v16, 0.0  ;;  %v267_v19 = vsel %vm236_vm0, %v1186_v17, 0.0  ;;  %s193_s9 = scalar_lea.vmem [#allocation2], %s814_s8  ;;  %s1340_s19 = scalar_lea.sflag [#allocation3], %s191_s5 }
  0x1d   : > { %v302_v20 = vmul.f32 %v1165_v6, %v1165_v6  ;;  %v301_v21 = vmul.f32 %v1161_v4, %v1161_v4  ;;  %v334_v24 = vmul.f32 %v1163_v5, %v1163_v5  ;;  %v333_v25 = vmul.f32 %v1159_v3, %v1159_v3  ;;  %921 = vmatprep.subr.bf16.mxu0 %v987_v7  ;;  %s748_s10 = sshll.u32 %s193_s9, 4  ;;  %s1331_s10 = int_to_ptr.vmem [resolvable:$true] %s748_s10 }
  0x1e   : > { %v304_v28 = vmul.f32 %v1176_v12, %v1176_v12  ;;  %v303_v29 = vmul.f32 %v1178_v13, %v1178_v13  ;;  %v336_v32 = vmul.f32 %v1184_v16, %v1184_v16  ;;  %v335_v33 = vmul.f32 %v1186_v17, %v1186_v17  ;;  %906 = vmatpush3.bf16.msra.mxu1 %v986_v2  ;;  %s1010_s20 = scalar_lea.vmem %s1331_s10, 512  ;;  %p1017_p0 = scmp.lt.s32.totalorder %s1331_s10, %s1015_s23 }
  0x1f   : > { %v312_v22 = vsel %vm236_vm0, %v302_v20, 0.0  ;;  %v309_v23 = vsel %vm236_vm0, %v301_v21, 0.0  ;;  %v344_v26 = vsel %vm236_vm0, %v334_v24, 0.0  ;;  %v341_v27 = vsel %vm236_vm0, %v333_v25, 0.0  ;;  %922 = vmatpush3.bf16.msra.mxu0 %v987_v7  ;;  %v990_v20 = vld [vmem:[%s1383_s2 + $0x10] sm:$0xff]   ;;  %p1011_p11 = scmp.ne.s32.totalorder %s1331_s10, %s1010_s20  ;;  %p1018_p1 = scmp.lt.s32.totalorder %s1016_s27, %s1010_s20 }
  0x20   : > { %265 = vadd.xlane.f32.xlu1 %v264_v10  ;;  %241 = vadd.xlane.f32.xlu0 %v240_v11  ;;  %v318_v30 = vsel %vm236_vm0, %v304_v28, 0.0  ;;  %v315_v31 = vsel %vm236_vm0, %v303_v29, 0.0  ;;  %v350_v36 = vsel %vm236_vm0, %v336_v32, 0.0  ;;  %v347_v37 = vsel %vm236_vm0, %v335_v33, 0.0  ;;  %v991_v21 = vld [vmem:[%s1382_s1 + $0x10] sm:$0xff]  }
  0x21   : > { %v1218_v38 = vunpack.c.l.bf16 %v208_v34  ;;  %v1220_v39 = vunpack.c.l.bf16 %v207_v35  ;;  %v1226_v42 = vunpack.c.h.bf16 %v208_v34  ;;  %v1228_v43 = vunpack.c.h.bf16 %v207_v35  ;;  %p1012_p12 = pnand %p1011_p11, %p1140_p5  ;;  %p1019_p2 = por %p1018_p1, %p1017_p0 }
  0x22   : > { %v1236_v48 = vunpack.c.l.bf16 %v210_v44  ;;  %v1238_v49 = vunpack.c.l.bf16 %v209_v45  ;;  %v1244_v52 = vunpack.c.h.bf16 %v210_v44  ;;  %v1246_v53 = vunpack.c.h.bf16 %v209_v45 }
  0x23   : > { %v252_v40 = vsel %vm236_vm0, %v1218_v38, 0.0  ;;  %v249_v41 = vsel %vm236_vm0, %v1220_v39, 0.0  ;;  %v276_v46 = vsel %vm236_vm0, %v1226_v42, 0.0  ;;  %v273_v47 = vsel %vm236_vm0, %v1228_v43, 0.0  ;;  %p1013_p13 = pneg %p1012_p12 }
  0x24   : > { %247 = vadd.xlane.f32.xlu1 %v246_v14  ;;  %244 = vadd.xlane.f32.xlu0 %v243_v15  ;;  %v258_v50 = vsel %vm236_vm0, %v1236_v48, 0.0  ;;  %v255_v51 = vsel %vm236_vm0, %v1238_v49, 0.0  ;;  %v282_v54 = vsel %vm236_vm0, %v1244_v52, 0.0  ;;  %v279_v55 = vsel %vm236_vm0, %v1246_v53, 0.0  ;;  %v988_v14 = vld [vmem:[%s1383_s2 + $0x8] sm:$0xff]  }
  0x25   : > { %v306_v56 = vmul.f32 %v1218_v38, %v1218_v38  ;;  %v305_v57 = vmul.f32 %v1220_v39, %v1220_v39  ;;  %v338_v60 = vmul.f32 %v1226_v42, %v1226_v42  ;;  %v337_v61 = vmul.f32 %v1228_v43, %v1228_v43  ;;  %v989_v15 = vld [vmem:[%s1382_s1 + $0x8] sm:$0xff]   ;;  %907 = vmatprep.subr.bf16.mxu1 %v988_v14  ;;  %p1020_p3 = pnand %p1019_p2, %p1013_p13 }
  0x26   : > { %v308_v0 = vmul.f32 %v1236_v48, %v1236_v48  ;;  %v307_v1 = vmul.f32 %v1238_v49, %v1238_v49  ;;  %v340_v10 = vmul.f32 %v1244_v52, %v1244_v52  ;;  %v339_v11 = vmul.f32 %v1246_v53, %v1246_v53  ;;  %923 = vmatprep.subr.bf16.mxu0 %v989_v15 }
  0x27   : > { %v324_v58 = vsel %vm236_vm0, %v306_v56, 0.0  ;;  %v321_v59 = vsel %vm236_vm0, %v305_v57, 0.0  ;;  %v356_v62 = vsel %vm236_vm0, %v338_v60, 0.0  ;;  %v353_v63 = vsel %vm236_vm0, %v337_v61, 0.0  ;;  %908 = vmatpush3.bf16.msra.mxu1 %v988_v14  ;;  %924 = vmatpush3.bf16.msra.mxu0 %v989_v15 }
  0x28   : > { %271 = vadd.xlane.f32.xlu1 %v270_v18  ;;  %268 = vadd.xlane.f32.xlu0 %v267_v19  ;;  %v330_v8 = vsel %vm236_vm0, %v308_v0, 0.0  ;;  %v327_v9 = vsel %vm236_vm0, %v307_v1, 0.0  ;;  %v362_v18 = vsel %vm236_vm0, %v340_v10, 0.0  ;;  %v359_v19 = vsel %vm236_vm0, %v339_v11, 0.0 }
  0x29   : > { %909 = vmatprep.subr.bf16.mxu1 %v990_v20  ;;  %925 = vmatprep.subr.bf16.mxu0 %v991_v21 }
  0x2b   : > { %910 = vmatpush3.bf16.msra.mxu1 %v990_v20  ;;  %926 = vmatpush3.bf16.msra.mxu0 %v991_v21 }
  0x2c   : > { %313 = vadd.xlane.f32.xlu1 %v312_v22  ;;  %310 = vadd.xlane.f32.xlu0 %v309_v23  ;;  %v992_v22 = vld [vmem:[%s1383_s2 + $0x18] sm:$0xff]  }
  0x2d   : > { %v993_v23 = vld [vmem:[%s1382_s1 + $0x18] sm:$0xff]   ;;  %911 = vmatprep.subr.bf16.mxu1 %v992_v22 }
  0x2e   : > { %927 = vmatprep.subr.bf16.mxu0 %v993_v23 }
  0x2f   : > { %912 = vmatpush3.bf16.msra.mxu1 %v992_v22  ;;  %928 = vmatpush3.bf16.msra.mxu0 %v993_v23 }
  0x30   : > { %345 = vadd.xlane.f32.xlu1 %v344_v26  ;;  %342 = vadd.xlane.f32.xlu0 %v341_v27 }
  0x34   : > { %319 = vadd.xlane.f32.xlu1 %v318_v30  ;;  %316 = vadd.xlane.f32.xlu0 %v315_v31 }
  0x38   : > { %351 = vadd.xlane.f32.xlu1 %v350_v36  ;;  %348 = vadd.xlane.f32.xlu0 %v347_v37 }
  0x3c   : > { %253 = vadd.xlane.f32.xlu1 %v252_v40  ;;  %250 = vadd.xlane.f32.xlu0 %v249_v41 }
  0x40   : > { %277 = vadd.xlane.f32.xlu1 %v276_v46  ;;  %274 = vadd.xlane.f32.xlu0 %v273_v47 }
  0x44   : > { %259 = vadd.xlane.f32.xlu1 %v258_v50  ;;  %256 = vadd.xlane.f32.xlu0 %v255_v51 }
  0x48   : > { %283 = vadd.xlane.f32.xlu1 %v282_v54  ;;  %280 = vadd.xlane.f32.xlu0 %v279_v55 }
  0x4c   : > { %325 = vadd.xlane.f32.xlu1 %v324_v58  ;;  %322 = vadd.xlane.f32.xlu0 %v321_v59 }
  0x50   : > { %357 = vadd.xlane.f32.xlu1 %v356_v62  ;;  %354 = vadd.xlane.f32.xlu0 %v353_v63 }
  0x54   : > { %331 = vadd.xlane.f32.xlu1 %v330_v8  ;;  %328 = vadd.xlane.f32.xlu0 %v327_v9 }
  0x58   : > { %363 = vadd.xlane.f32.xlu1 %v362_v18  ;;  %360 = vadd.xlane.f32.xlu0 %v359_v19 }
  0xa9   : > { %v263_v24 = vpop.xlane.xlu1 %262  ;;  %v239_v25 = vpop.xlane.xlu0 %238 }
  0xaa   : > { %v285_v32 = vadd.f32 %v263_v24, %v239_v25 }
  0xac   : > { %v293_v36 = vmul.f32 0.0078125, %v285_v32 }
  0xad   : > { %v266_v26 = vpop.xlane.xlu1 %265  ;;  %v242_v27 = vpop.xlane.xlu0 %241 }
  0xae   : > { %v286_v33 = vadd.f32 %v266_v26, %v242_v27  ;;  %v381_v47 = vmul.f32 %v293_v36, %v293_v36 }
  0xb0   : > { %v294_v37 = vmul.f32 0.0078125, %v286_v33  ;;  %v437_v33 = vsub.f32 %v1159_v3, %v293_v36 }
  0xb1   : > { %v248_v28 = vpop.xlane.xlu1 %247  ;;  %v245_v29 = vpop.xlane.xlu0 %244 }
  0xb2   : > { %v382_v54 = vmul.f32 %v294_v37, %v294_v37 }
  0xb5   : > { %v272_v30 = vpop.xlane.xlu1 %271  ;;  %v269_v31 = vpop.xlane.xlu0 %268 }
  0xb6   : > { %v288_v46 = vadd.f32 %v272_v30, %v248_v28  ;;  %v287_v50 = vadd.f32 %v269_v31, %v245_v29  ;;  %v438_v30 = vsub.f32 %v1163_v5, %v294_v37  ;;  %v422_v31 = vsub.f32 %v1165_v6, %v294_v37 }
  0xb8   : > { %v296_v60 = vmul.f32 0.0078125, %v288_v46  ;;  %v295_v61 = vmul.f32 0.0078125, %v287_v50 }
  0xb9   : > { %v314_v34 = vpop.xlane.xlu1 %313  ;;  %v311_v35 = vpop.xlane.xlu0 %310 }
  0xba   : > { %v384_v10 = vmul.f32 %v296_v60, %v296_v60  ;;  %v383_v14 = vmul.f32 %v295_v61, %v295_v61  ;;  %v424_v5 = vsub.f32 %v1176_v12, %v296_v60  ;;  %v440_v3 = vsub.f32 %v1184_v16, %v296_v60 }
  0xbb   : > { %v423_v37 = vsub.f32 %v1178_v13, %v295_v61 }
  0xbd   : > { %v346_v40 = vpop.xlane.xlu1 %345  ;;  %v343_v41 = vpop.xlane.xlu0 %342 }
  0xbe   : > { %v366_v44 = vadd.f32 %v346_v40, %v314_v34  ;;  %v365_v45 = vadd.f32 %v343_v41, %v311_v35  ;;  %v421_v34 = vsub.f32 %v1161_v4, %v293_v36 }
  0xc0   : > { %v374_v51 = vmul.f32 0.0078125, %v366_v44  ;;  %v373_v55 = vmul.f32 0.0078125, %v365_v45 }
  0xc1   : > { %v320_v56 = vpop.xlane.xlu1 %319  ;;  %v317_v57 = vpop.xlane.xlu0 %316 }
  0xc2   : > { %v390_v58 = vsub.f32 %v374_v51, %v382_v54  ;;  %v389_v59 = vsub.f32 %v373_v55, %v381_v47 }
  0xc4   : > { %v398_v62 = vmax.f32 %v390_v58, 0.0  ;;  %v397_v63 = vmax.f32 %v389_v59, 0.0 }
  0xc5   : > { %v352_v0 = vpop.xlane.xlu1 %351  ;;  %v349_v1 = vpop.xlane.xlu0 %348 }
  0xc6   : > { %v406_v2 = vadd.f32 1e-05, %v398_v62  ;;  %v405_v7 = vadd.f32 1e-05, %v397_v63  ;;  %v368_v8 = vadd.f32 %v352_v0, %v320_v56  ;;  %v367_v9 = vadd.f32 %v349_v1, %v317_v57 }
  0xc7   : > { %v439_v56 = vsub.f32 %v1186_v17, %v295_v61 }
  0xc8   : > { %994 = vrsqrt.f32 %v406_v2  ;;  %v376_v11 = vmul.f32 0.0078125, %v368_v8  ;;  %v375_v15 = vmul.f32 0.0078125, %v367_v9 }
  0xc9   : > { %996 = vrsqrt.f32 %v405_v7  ;;  %v254_v18 = vpop.xlane.xlu1 %253  ;;  %v251_v19 = vpop.xlane.xlu0 %250 }
  0xca   : > { %v392_v20 = vsub.f32 %v376_v11, %v384_v10  ;;  %v391_v21 = vsub.f32 %v375_v15, %v383_v14 }
  0xcc   : > { %v400_v22 = vmax.f32 %v392_v20, 0.0  ;;  %v399_v23 = vmax.f32 %v391_v21, 0.0 }
  0xcd   : > { %v278_v24 = vpop.xlane.xlu1 %277  ;;  %v275_v25 = vpop.xlane.xlu0 %274 }
  0xce   : > { %v408_v26 = vadd.f32 1e-05, %v400_v22  ;;  %v407_v27 = vadd.f32 1e-05, %v399_v23  ;;  %v290_v54 = vadd.f32 %v278_v24, %v254_v18  ;;  %v289_v55 = vadd.f32 %v275_v25, %v251_v19 }
  0xd0   : > { %998 = vrsqrt.f32 %v408_v26  ;;  %v298_v58 = vmul.f32 0.0078125, %v290_v54  ;;  %v297_v63 = vmul.f32 0.0078125, %v289_v55 }
  0xd1   : > { %1000 = vrsqrt.f32 %v407_v27  ;;  %v260_v28 = vpop.xlane.xlu1 %259  ;;  %v257_v29 = vpop.xlane.xlu0 %256 }
  0xd2   : > { %v995_v32 = vpop.eup %994  ;;  %v386_v10 = vmul.f32 %v298_v58, %v298_v58  ;;  %v385_v13 = vmul.f32 %v297_v63, %v297_v63  ;;  %v441_v54 = vsub.f32 %v1228_v43, %v297_v63 }
  0xd3   : > { %v997_v35 = vpop.eup %996  ;;  %v446_v40 = vmul.f32 %v995_v32, %v438_v30  ;;  %v430_v41 = vmul.f32 %v995_v32, %v422_v31 }
  0xd4   : > { %v445_v44 = vmul.f32 %v997_v35, %v437_v33  ;;  %v429_v45 = vmul.f32 %v997_v35, %v421_v34 }
  0xd5   : > { %v284_v46 = vpop.xlane.xlu1 %283  ;;  %v281_v47 = vpop.xlane.xlu0 %280 }
  0xd6   : > { %v457_v50 = vpack.c.bf16 %v446_v40, %v445_v44  ;;  %v453_v51 = vpack.c.bf16 %v430_v41, %v429_v45  ;;  %v292_v60 = vadd.f32 %v284_v46, %v260_v28  ;;  %v291_v11 = vadd.f32 %v281_v47, %v257_v29 }
  0xd7   : > { %v426_v46 = vsub.f32 %v1218_v38, %v298_v58  ;;  %v442_v47 = vsub.f32 %v1226_v42, %v298_v58 }
  0xd8   : > { %913 = vmatprep.mubr.msk.bf16.mxu1 %vm236_vm0, %v457_v50  ;;  %929 = vmatprep.mubr.msk.bf16.mxu0 %vm236_vm0, %v453_v51  ;;  %v300_v20 = vmul.f32 0.0078125, %v292_v60  ;;  %v299_v21 = vmul.f32 0.0078125, %v291_v11  ;;  %v425_v51 = vsub.f32 %v1220_v39, %v297_v63 }
  0xd9   : > { %v326_v4 = vpop.xlane.xlu1 %325  ;;  %v323_v6 = vpop.xlane.xlu0 %322 }
  0xda   : > { %v999_v36 = vpop.eup %998  ;;  %v388_v30 = vmul.f32 %v300_v20, %v300_v20  ;;  %v387_v32 = vmul.f32 %v299_v21, %v299_v21  ;;  %v428_v38 = vsub.f32 %v1236_v48, %v300_v20  ;;  %v444_v42 = vsub.f32 %v1244_v52, %v300_v20 }
  0xdb   : > { %v1001_v57 = vpop.eup %1000  ;;  %v448_v59 = vmul.f32 %v999_v36, %v440_v3  ;;  %v432_v62 = vmul.f32 %v999_v36, %v424_v5  ;;  %v427_v39 = vsub.f32 %v1238_v49, %v299_v21  ;;  %v443_v43 = vsub.f32 %v1246_v53, %v299_v21  ;;  %v842_v53 = vld [vmem:[%s1384_s3] ss:$0 sm:$0xff] }
  0xdc   : > { %v447_v0 = vmul.f32 %v1001_v57, %v439_v56  ;;  %v431_v1 = vmul.f32 %v1001_v57, %v423_v37 }
  0xdd   : > { %v358_v2 = vpop.xlane.xlu1 %357  ;;  %v355_v7 = vpop.xlane.xlu0 %354 }
  0xde   : > { %v370_v8 = vadd.f32 %v358_v2, %v326_v4  ;;  %v369_v12 = vadd.f32 %v355_v7, %v323_v6  ;;  %v458_v9 = vpack.c.bf16 %v448_v59, %v447_v0  ;;  %v454_v16 = vpack.c.bf16 %v432_v62, %v431_v1 }
  0xe0   : > { %v378_v14 = vmul.f32 0.0078125, %v370_v8  ;;  %v377_v15 = vmul.f32 0.0078125, %v369_v12  ;;  %914 = vmatmul.mubr.msk.bf16.vlgmr.msra.gmra.mrb[0].mxu1 %vm236_vm0, %v458_v9  ;;  %930 = vmatmul.mubr.msk.bf16.vlgmr.msra.gmra.mrb[0].mxu0 %vm236_vm0, %v454_v16 }
  0xe1   : > { %v332_v17 = vpop.xlane.xlu1 %331  ;;  %v329_v61 = vpop.xlane.xlu0 %328 }
  0xe2   : > { %v394_v18 = vsub.f32 %v378_v14, %v386_v10  ;;  %v393_v19 = vsub.f32 %v377_v15, %v385_v13 }
  0xe4   : > { %v402_v22 = vmax.f32 %v394_v18, 0.0  ;;  %v401_v23 = vmax.f32 %v393_v19, 0.0 }
  0xe5   : > { %v364_v24 = vpop.xlane.xlu1 %363  ;;  %v361_v25 = vpop.xlane.xlu0 %360 }
  0xe6   : > { %v410_v26 = vadd.f32 1e-05, %v402_v22  ;;  %v409_v27 = vadd.f32 1e-05, %v401_v23  ;;  %v372_v28 = vadd.f32 %v364_v24, %v332_v17  ;;  %v371_v29 = vadd.f32 %v361_v25, %v329_v61 }
  0xe8   : > { %1002 = vrsqrt.f32 %v410_v26  ;;  %v380_v31 = vmul.f32 0.0078125, %v372_v28  ;;  %v379_v33 = vmul.f32 0.0078125, %v371_v29 }
  0xe9   : > { %1004 = vrsqrt.f32 %v409_v27 }
  0xea   : > { %v396_v34 = vsub.f32 %v380_v31, %v388_v30  ;;  %v395_v35 = vsub.f32 %v379_v33, %v387_v32 }
  0xec   : > { %v404_v40 = vmax.f32 %v396_v34, 0.0  ;;  %v403_v41 = vmax.f32 %v395_v35, 0.0 }
  0xee   : > { %v412_v44 = vadd.f32 1e-05, %v404_v40  ;;  %v411_v45 = vadd.f32 1e-05, %v403_v41 }
  0xf0   : > { %1006 = vrsqrt.f32 %v412_v44 }
  0xf1   : > { %1008 = vrsqrt.f32 %v411_v45 }
  0xf2   : > { %v1003_v50 = vpop.eup %1002 }
  0xf3   : > { %v1005_v55 = vpop.eup %1004  ;;  %v450_v5 = vmul.f32 %v1003_v50, %v442_v47  ;;  %v434_v3 = vmul.f32 %v1003_v50, %v426_v46 }
  0xf4   : > { %v449_v4 = vmul.f32 %v1005_v55, %v441_v54  ;;  %v433_v6 = vmul.f32 %v1005_v55, %v425_v51 }
  0xf6   : > { %v459_v36 = vpack.c.bf16 %v450_v5, %v449_v4  ;;  %v455_v37 = vpack.c.bf16 %v434_v3, %v433_v6 }
  0xf8   : > { %917 = vmatprep.mubr.msk.bf16.mxu1 %vm236_vm0, %v459_v36  ;;  %933 = vmatprep.mubr.msk.bf16.mxu0 %vm236_vm0, %v455_v37 }
  0xfa   : > { %v1007_v56 = vpop.eup %1006 }
  0xfb   : > { %v1009_v57 = vpop.eup %1008  ;;  %v452_v58 = vmul.f32 %v1007_v56, %v444_v42  ;;  %v436_v59 = vmul.f32 %v1007_v56, %v428_v38 }
  0xfc   : > { %v451_v62 = vmul.f32 %v1009_v57, %v443_v43  ;;  %v435_v63 = vmul.f32 %v1009_v57, %v427_v39 }
  0xfe   : > { %v460_v0 = vpack.c.bf16 %v452_v58, %v451_v62  ;;  %v456_v1 = vpack.c.bf16 %v436_v59, %v435_v63 }
 0x100   : > { %918 = vmatmul.mubr.msk.bf16.gmra.mrb[4].mxu1 %vm236_vm0, %v460_v0  ;;  %934 = vmatmul.mubr.msk.bf16.gmra.mrb[4].mxu0 %vm236_vm0, %v456_v1 }
 0x1b3   : > { %v915_v48 = vpop.f32.mrb[0].mxu1  ;;  %v931_v2 = vpop.f32.mrb[0].mxu0 }
 0x1b4   : > { %v657_v52 = vadd.f32 %v931_v2, %v915_v48  ;;  %v547_v7 = vpop.f32.mrb[1].mxu1  ;;  %v648_v49 = vpop.f32.mrb[1].mxu0 }
 0x1b5   : > { %v649_v8 = vadd.f32 %v648_v49, %v547_v7  ;;  %v916_v12 = vpop.f32.mrb[2].mxu1  ;;  %v932_v9 = vpop.f32.mrb[2].mxu0 }
 0x1b6   : > { %v660_v16 = vadd.f32 %v932_v9, %v916_v12  ;;  %v550_v60 = vpop.f32.mrb[3].mxu1  ;;  %v651_v10 = vpop.f32.mrb[3].mxu0  ;;  %v688_v14 = vadd.f32 %v842_v53, %v657_v52 }
 0x1b7   : > { %v652_v11 = vadd.f32 %v651_v10, %v550_v60  ;;  %v686_v15 = vadd.f32 %v842_v53, %v649_v8 }
 0x1b8   : > { %v689_v13 = vadd.f32 %v842_v53, %v660_v16 }
 0x1b9   : > { %v687_v17 = vadd.f32 %v842_v53, %v652_v11 }
 0x1ba   : > { %v874_v61 = vpack.c.bf16 %v689_v13, %v688_v14 }
 0x1bb   : > { %v869_v18 = vpack.c.bf16 %v687_v17, %v686_v15 }
 0x1bc   : > { %886 = vst [vmem:[%s193_s9 + $0x8] sm:$0xff] %v874_v61  }
 0x1bd   : > { %870 = vst [vmem:[%s193_s9] sm:$0xff] %v869_v18  }
 0x1d3   : > { %v919_v19 = vpop.f32.mrb[4].mxu1  ;;  %v935_v20 = vpop.f32.mrb[4].mxu0 }
 0x1d4   : > { %v673_v21 = vadd.f32 %v935_v20, %v919_v19  ;;  %v563_v22 = vpop.f32.mrb[5].mxu1  ;;  %v664_v23 = vpop.f32.mrb[5].mxu0 }
 0x1d5   : > { %v665_v24 = vadd.f32 %v664_v23, %v563_v22  ;;  %v920_v25 = vpop.f32.mrb[6].mxu1  ;;  %v936_v26 = vpop.f32.mrb[6].mxu0 }
 0x1d6   : > { %v676_v27 = vadd.f32 %v936_v26, %v920_v25  ;;  %v566_v28 = vpop.f32.mrb[7].mxu1  ;;  %v667_v29 = vpop.f32.mrb[7].mxu0  ;;  %v692_v31 = vadd.f32 %v842_v53, %v673_v21 }
 0x1d7   : > { %v668_v30 = vadd.f32 %v667_v29, %v566_v28  ;;  %v690_v33 = vadd.f32 %v842_v53, %v665_v24 }
 0x1d8   : > { %v693_v32 = vadd.f32 %v842_v53, %v676_v27 }
 0x1d9   : > { %v691_v34 = vadd.f32 %v842_v53, %v668_v30 }
 0x1da   : > { %v884_v35 = vpack.c.bf16 %v693_v32, %v692_v31 }
 0x1db   : > { %v879_v40 = vpack.c.bf16 %v691_v34, %v690_v33 }
 0x1dc   : > { %888 = vst [vmem:[%s193_s9 + $0x18] sm:$0xff] %v884_v35  }
 0x1dd   : > { %887 = vst [vmem:[%s193_s9 + $0x10] sm:$0xff] %v879_v40  }
 0x1de   : > { %1023 = shalt.err (!%p1020_p3)
}
 0x1df   : > { %s1024_s28 = scalar_lea.hbm %s1336_s14, 512  ;;  %s1028_s5 = scalar_lea.hbm %s1385_s4, 1024 }
 0x1e0   : > { %p1025_p4 = scmp.ne.s32.totalorder %s1336_s14, %s1024_s28  ;;  %p1029_p9 = scmp.lt.u32.totalorder %s1336_s14, %s1385_s4 }
 0x1e1   : > { %p1030_p10 = scmp.lt.u32.totalorder %s1028_s5, %s1024_s28  ;;  %p1032_p12 = scmp.lt.u32.totalorder %s1024_s28, %s1336_s14 }
 0x1e2   : > { %p1026_p7 = pnand %p1025_p4, %p1140_p5 }
 0x1e3   : > { %p1031_p11 = por %p1030_p10, %p1029_p9 }
 0x1e4   : > { %p1027_p8 = pneg %p1026_p7 }
 0x1e5   : > { %p1033_p13 = por %p1032_p12, %p1031_p11 }
 0x1e7   : > { %p1034_p0 = pnand %p1033_p13, %p1027_p8 }
 0x1e9   : > { %1037 = shalt.err (!%p1034_p0)
}
 0x1ea   : > { %s1075_s8 = smov 64   ;;  %s1076_s9 = smov 4  }
 0x1eb   : > { %945 = dma.vmem_to_hbm [thread:$0]  (%p1140_p5), %s1331_s10, 512, %s1336_s14, %s1340_s19, %s1075_s8, %s1075_s8, %s1076_s9  }
 0x1ec PF: > { %p951_p1 = scmp.ge.s32.totalorder %s1072_s18, 2  ;;  %s763_s11 = sand.u32 1, %s1060_s15  }
 0x1ed   : > { %s764_s12 = scalar_lea.sflag [#allocation3], %s763_s11 }
 0x1ee   : > { %p948_p2 = pnand %p951_p1, %p1144_p6 }
 0x1f0   : > { %1055 = dma.done.wait (!%p948_p2), %s764_s12, 512  }
 0x1f1   : > { %1057 = vsyncadd (!%p948_p2), %s764_s12, 4294966784  ;;  %p14_p3 = scmp.ge.s32.totalorder %s1127_s21, 4   ;;  %s1388_s15 = smov %s1064_s16 }
 0x1f2   : > { %s1389_s16 = smov %s1068_s17  ;;  %s1390_s17 = smov %s1138_s24 }
 0x1f3   : > { %s1391_s18 = smov %s1127_s21  ;;  %16 = sbr.rel (!%p14_p3) target bundleno = 3 (0x3), region = 72 }
 0x1fa   :  { %769 = vsyncpa [#allocation3], 1 }
 0x1fb   :  { %771 = vsyncpa [#allocation3 + $0x1], 1 }

</bundles_post_ra>
